<compile_context>
chip_gen: v6e
topology: v6e:2x2x1
jax: 0.10.0
libtpu: 0.0.40
codegen_flags: <defaults>
</compile_context>

<pallas_src>
import jax
import jax.numpy as jnp
from jax import lax
from jax.experimental import pallas as pl
from jax.experimental.pallas import tpu as pltpu


def _round_up(x, m):
    return ((x + m - 1) // m) * m


def _cdiv(a, b):
    return (a + b - 1) // b


def _pick_tm(B, tm_max=256):
    # Tile B tightly: e.g. B=260 -> tm=136 (Mp=272) instead of tm=256 (Mp=512).
    n_blocks = _cdiv(B, tm_max)
    return _round_up(_cdiv(B, n_blocks), 8)


# ----------------------------- kernels ---------------------------------------


def _binary_linear_kernel_acc(alpha_ref, x_ref, w_ref, o_ref, acc_ref):
    # alpha: (1,) f32 in SMEM
    # x_ref: (tm, tk) bf16 activation tile
    # w_ref: (tk, tn) int8 sign tile, K-major (pre-transposed in the wrapper)
    # o_ref: (tm, tn) output tile
    # acc_ref: (tm, tn) f32 accumulator, resident across the K grid axis
    k = pl.program_id(2)

    @pl.when(k == 0)
    def _():
        acc_ref[...] = jnp.zeros_like(acc_ref)

    x = x_ref[...]                                # (tm, tk) bf16
    w = w_ref[...].astype(jnp.bfloat16)           # (tk, tn), exact {-1, 0, +1}
    acc_ref[...] += lax.dot_general(
        x, w,
        dimension_numbers=(((1,), (0,)), ((), ())),
        preferred_element_type=jnp.float32,
    )

    @pl.when(k == pl.num_programs(2) - 1)
    def _():
        o_ref[...] = (acc_ref[...] * alpha_ref[0]).astype(o_ref.dtype)


def _binary_linear_kernel_single_k(alpha_ref, x_ref, w_ref, o_ref):
    # Single K step: no accumulator round-trip through VMEM.
    x = x_ref[...]
    w = w_ref[...].astype(jnp.bfloat16)
    out = lax.dot_general(
        x, w,
        dimension_numbers=(((1,), (0,)), ((), ())),
        preferred_element_type=jnp.float32,
    )
    o_ref[...] = (out * alpha_ref[0]).astype(o_ref.dtype)


# ----------------------------- wrappers ---------------------------------------


def prepare_binary_weight(weight, *, tn=2048, tk=1024):
    """Binarize, transpose to (K, N) and pad ONCE (at param-load / weight-update
    time). weight: (out_features, in_features) f32.

    Returns (w_sign_t int8 of shape (Kp, Np), meta dict)."""
    # TODO(synk): DualRateAlphaFunction source not provided; forward assumed to
    #             be alpha * sign(W) (jnp.sign(0)=0; some binary nets map 0 -> +1).
    N, K = weight.shape
    tn = min(tn, _round_up(N, 128))
    tk = min(tk, _round_up(K, 128))
    Np, Kp = _round_up(N, tn), _round_up(K, tk)
    w = jnp.sign(weight).astype(jnp.int8).T            # (K, N)
    if (Kp, Np) != (K, N):
        w = jnp.pad(w, ((0, Kp - K), (0, Np - N)))     # zero pads contribute 0
    meta = dict(N=N, K=K, Np=Np, Kp=Kp, tn=tn, tk=tk)
    return w, meta


def binary_linear_prepared(x, w_prep, alpha, meta, *, tm_max=256):
    """x: (B, in_features); w_prep/meta from prepare_binary_weight; alpha scalar."""
    B, K = x.shape
    assert K == meta["K"], (K, meta["K"])
    N, Np, Kp, tn, tk = meta["N"], meta["Np"], meta["Kp"], meta["tn"], meta["tk"]

    tm = _pick_tm(B, tm_max)
    Mp = _round_up(B, tm)

    # v7x has 2 TensorCores sharded over the "parallel" axes; if the parallel
    # grid collapsed to one block and tn can be halved at zero padding cost,
    # split it so both cores get work (no-op cost on single-TC v5e/v6e).
    if (Mp // tm) * (Np // tn) == 1 and tn % 256 == 0:
        tn //= 2

    # bf16 activations (halves x DMA); weights stay exact +-1/0; f32 accumulate.
    x_bf = x.astype(jnp.bfloat16)
    if (Mp, Kp) != (B, K):
        x_bf = jnp.pad(x_bf, ((0, Mp - B), (0, Kp - K)))

    alpha_arr = jnp.asarray(alpha, jnp.float32).reshape(1)
    out_dtype = x.dtype
    out_itemsize = jnp.dtype(out_dtype).itemsize

    grid_i, grid_j, n_k = Mp // tm, Np // tn, Kp // tk

    # Double-buffered working set + accumulator; explicit VMEM limit so larger
    # tiles stay pipelined on v5e (16 MiB default) and fit v7x (64 MiB physical).
    vmem_bytes = (2 * tm * tk * 2            # x bf16, 2 buffers
                  + 2 * tk * tn * 1          # w int8, 2 buffers
                  + 2 * tm * tn * out_itemsize
                  + (tm * tn * 4 if n_k > 1 else 0))
    vmem_limit = min(max(int(1.5 * vmem_bytes) + (4 << 20), 16 << 20), 48 << 20)

    cost = pl.CostEstimate(
        flops=2 * Mp * Np * Kp,
        transcendentals=0,
        bytes_accessed=Mp * Kp * 2 + Np * Kp + Mp * Np * out_itemsize,
    )

    if n_k == 1:
        out = pl.pallas_call(
            _binary_linear_kernel_single_k,
            out_shape=jax.ShapeDtypeStruct((Mp, Np), out_dtype),
            grid_spec=pltpu.PrefetchScalarGridSpec(
                num_scalar_prefetch=0,
                grid=(grid_i, grid_j),
                in_specs=[
                    pl.BlockSpec(memory_space=pltpu.SMEM),          # alpha
                    pl.BlockSpec((tm, tk), lambda i, j: (i, 0)),    # x tile
                    pl.BlockSpec((tk, tn), lambda i, j: (0, j)),    # w tile (K, N)
                ],
                out_specs=pl.BlockSpec((tm, tn), lambda i, j: (i, j)),
            ),
            compiler_params=pltpu.CompilerParams(
                dimension_semantics=("parallel", "parallel"),
                vmem_limit_bytes=vmem_limit,
            ),
            cost_estimate=cost,
        )(alpha_arr, x_bf, w_prep)
    else:
        out = pl.pallas_call(
            _binary_linear_kernel_acc,
            out_shape=jax.ShapeDtypeStruct((Mp, Np), out_dtype),
            grid_spec=pltpu.PrefetchScalarGridSpec(
                num_scalar_prefetch=0,
                grid=(grid_i, grid_j, n_k),
                in_specs=[
                    pl.BlockSpec(memory_space=pltpu.SMEM),               # alpha
                    pl.BlockSpec((tm, tk), lambda i, j, k: (i, k)),      # x tile
                    pl.BlockSpec((tk, tn), lambda i, j, k: (k, j)),      # w tile
                ],
                out_specs=pl.BlockSpec((tm, tn), lambda i, j, k: (i, j)),
                scratch_shapes=[pltpu.VMEM((tm, tn), jnp.float32)],
            ),
            compiler_params=pltpu.CompilerParams(
                dimension_semantics=("parallel", "parallel", "arbitrary"),
                vmem_limit_bytes=vmem_limit,
            ),
            cost_estimate=cost,
        )(alpha_arr, x_bf, w_prep)

    if (Mp, Np) != (B, N):
        out = out[:B, :N]
    return out


def binary_linear(x, weight, alpha, **kw):
    """Convenience one-shot path. For real use, cache prepare_binary_weight()
    at parameter-load / weight-update time and call binary_linear_prepared."""
    w_prep, meta = prepare_binary_weight(weight)
    return binary_linear_prepared(x, w_prep, alpha, meta, **kw)


# ----------------------------- test -------------------------------------------


if __name__ == "__main__":
    key = jax.random.PRNGKey(0)

    # Case 1: small layer, single K step (nn.Linear(32, 16), batch 8).
    batch, in_features, out_features = 8, 32, 16
    kx, kw, key = jax.random.split(key, 3)
    x = jax.random.normal(kx, (batch, in_features), dtype=jnp.float32)
    weight = jax.random.normal(kw, (out_features, in_features), jnp.float32) * 0.1
    alpha = jnp.float32(0.5)  # nn.Parameter(torch.ones(1) * 0.5)

    out = jax.block_until_ready(binary_linear(x, weight, alpha))
    ref = x @ (alpha * jnp.sign(weight)).T
    assert out.shape == (batch, out_features)
    assert jnp.allclose(out, ref, atol=5e-2, rtol=2e-2), "case1 mismatch"

    # Case 2: multi-K-step accumulator path + cached/prepared weight
    # (small tk forces Kp // tk == 2; exercises pl.when init/finalize).
    batch2, in2, out2 = 16, 256, 384
    kx2, kw2 = jax.random.split(key)
    x2 = jax.random.normal(kx2, (batch2, in2), dtype=jnp.float32)
    w2 = jax.random.normal(kw2, (out2, in2), dtype=jnp.float32) * 0.1
    w2_prep, meta2 = prepare_binary_weight(w2, tk=128)
    out2_arr = jax.block_until_ready(
        binary_linear_prepared(x2, w2_prep, alpha, meta2))
    ref2 = x2 @ (alpha * jnp.sign(w2)).T
    assert out2_arr.shape == (batch2, out2)
    assert jnp.allclose(out2_arr, ref2, atol=1e-1, rtol=2e-2), "case2 mismatch"

    print("KERNEL_OK")
</pallas_src>

<mosaic_0001>
module attributes {stable_mosaic.version = 11 : i64} {
  func.func @_binary_linear_kernel_single_k(%arg0: i32, %arg1: i32, %arg2: memref<1xf32, #tpu.memory_space<smem>>, %arg3: memref<8x128xbf16, #tpu.memory_space<vmem>>, %arg4: memref<128x128xi8, #tpu.memory_space<vmem>>, %arg5: memref<8x128xf32, #tpu.memory_space<vmem>>) attributes {dimension_semantics = [#tpu.dimension_semantics<parallel>, #tpu.dimension_semantics<parallel>], iteration_bounds = array<i64: 1, 1>, scalar_prefetch = 0 : i64, scratch_operands = 0 : i64, tpu.core_type = #tpu.core_type<tc>, window_params = [{transform_indices = @transform_0, window_bounds = array<i64: 1>}, {transform_indices = @transform_1, window_bounds = array<i64: 8, 128>}, {transform_indices = @transform_2, window_bounds = array<i64: 128, 128>}, {transform_indices = @transform_3, window_bounds = array<i64: 8, 128>}]} {
    %c0 = arith.constant 0 : index
    %c0_0 = arith.constant 0 : index
    %0 = vector.load %arg3[%c0, %c0_0] : memref<8x128xbf16, #tpu.memory_space<vmem>>, vector<8x128xbf16>
    %c0_1 = arith.constant 0 : index
    %c0_2 = arith.constant 0 : index
    %1 = vector.load %arg4[%c0_1, %c0_2] : memref<128x128xi8, #tpu.memory_space<vmem>>, vector<128x128xi8>
    %2 = arith.sitofp %1 : vector<128x128xi8> to vector<128x128xbf16>
    %cst = arith.constant dense<0.000000e+00> : vector<8x128xf32>
    %3 = tpu.matmul %0, %2, %cst {dimension_numbers = #tpu.dot_dimension_numbers<[1], [0], [0], [1], [0, 0, 1, 1], [], []>} : vector<8x128xbf16>, vector<128x128xbf16>, vector<8x128xf32> -> vector<8x128xf32>
    %c0_3 = arith.constant 0 : index
    %4 = memref.load %arg2[%c0_3] : memref<1xf32, #tpu.memory_space<smem>>
    %5 = vector.broadcast %4 : f32 to vector<8x128xf32>
    %6 = arith.mulf %3, %5 : vector<8x128xf32>
    %c0_4 = arith.constant 0 : index
    %c0_5 = arith.constant 0 : index
    %7 = vector.load %arg5[%c0_4, %c0_5] : memref<8x128xf32, #tpu.memory_space<vmem>>, vector<8x128xf32>
    tpu.vector_store %arg5[%c0_4, %c0_5], %6 {strides = array<i32>} : memref<8x128xf32, #tpu.memory_space<vmem>>, vector<8x128xf32>,
    return
  }
  func.func @transform_0(%arg0: i32, %arg1: i32) -> i32 {
    %c0_i32 = arith.constant 0 : i32
    %c0_i32_0 = arith.constant 0 : i32
    return %c0_i32 : i32
  }
  func.func @transform_1(%arg0: i32, %arg1: i32) -> (i32, i32) {
    %c0_i32 = arith.constant 0 : i32
    %c0_i32_0 = arith.constant 0 : i32
    return %arg0, %c0_i32 : i32, i32
  }
  func.func @transform_2(%arg0: i32, %arg1: i32) -> (i32, i32) {
    %c0_i32 = arith.constant 0 : i32
    %c0_i32_0 = arith.constant 0 : i32
    return %c0_i32, %arg1 : i32, i32
  }
  func.func @transform_3(%arg0: i32, %arg1: i32) -> (i32, i32) {
    %c0_i32 = arith.constant 0 : i32
    return %arg0, %arg1 : i32, i32
  }
}

</mosaic_0001>

<bundles_post_ra>
// kernel: tpu_custom_call.1
= control target key start
LH: loop header
LB: loop body
LE: loop exit
PB: predicated region body
PF: predicated region fallthrough
CT: control target
= control target key end

     0   :  { %9 = vsyncpa [#allocation4], 0  ;;  %s257_s0 = inlined_call_operand.<no memory space> [shape: f32[1], index: 0, kind: input, shape index: {}]   ;;  %s258_s1 = inlined_call_operand.hbm [shape: bf16[8,128], index: 1, kind: input, shape index: {}]   ;;  %s259_s2 = inlined_call_operand.hbm [shape: s8[128,128], index: 2, kind: input, shape index: {}]   ;;  %s260_s3 = inlined_call_operand.hbm [shape: f32[8,128], index: 3, kind: output, shape index: {}]  }
   0x1   :  { %10 = vsyncpa [#allocation7], 0 }
   0x2   :  { %11 = vsyncpa [#allocation5], 0  ;;  %s218_s12 = smov [#allocation3]   ;;  %s219_s14 = smov [#allocation6]  }
   0x3   :  { %s20_s13 = sshll.u32 %s218_s12, 4  ;;  %s29_s15 = sshll.u32 %s219_s14, 4  ;;  %s21_s13 = int_to_ptr.vmem [resolvable:$true] %s20_s13  ;;  %s30_s15 = int_to_ptr.vmem [resolvable:$true] %s29_s15 }
   0x4   :  { %s160_s16 = scalar_lea.vmem %s21_s13, 64  ;;  %p165_p1 = scmp.lt.s32.totalorder %s21_s13, %s21_s13 }
   0x5   :  { %p161_p0 = scmp.ne.s32.totalorder %s21_s13, %s160_s16  ;;  %p166_p2 = scmp.lt.s32.totalorder %s160_s16, %s160_s16 }
   0x7   :  { %p167_p3 = por %p166_p2, %p165_p1 }
   0x9   :  { %p168_p4 = pnand %p167_p3, %p161_p0 }
   0xb   :  { %171 = shalt.err (!%p168_p4)
}
   0xc   :  { %23 = dma.hbm_to_vmem [thread:$0]  %s258_s1, 64, %s21_s13, [#allocation4]  }
   0xd   :  { %s180_s19 = scalar_lea.vmem %s30_s15, 512  ;;  %p185_p6 = scmp.lt.s32.totalorder %s30_s15, %s30_s15 }
   0xe   :  { %p181_p5 = scmp.ne.s32.totalorder %s30_s15, %s180_s19  ;;  %p186_p7 = scmp.lt.s32.totalorder %s180_s19, %s180_s19 }
  0x10   :  { %p187_p8 = por %p186_p7, %p185_p6 }
  0x12   :  { %p188_p9 = pnand %p187_p8, %p181_p5 }
  0x14   :  { %191 = shalt.err (!%p188_p9)
}
  0x15   :  { %s220_s20 = smov 128   ;;  %s221_s21 = smov 8  }
  0x16   :  { %35 = dma.hbm_to_vmem [thread:$0]  %s259_s2, 512, %s30_s15, [#allocation7], %s220_s20, %s220_s20, %s221_s21  }
  0x17   :  { %212 = dma.done.wait [#allocation4], 64  }
  0x18   :  { %213 = vsyncadd [#allocation4], 4294967232 }
  0x19   :  { %214 = dma.done.wait [#allocation7], 512  }
  0x1a   :  { %215 = vsyncadd [#allocation7], 4294966784  ;;  %v222_v0 = vmov 0.0   ;;  %vm223_vm0 = vmmov 0   ;;  %v47_v1 = vld [vmem:[#allocation6 + $0x18] sm:$0xff]  ;;  %v46_v4 = vld [vmem:[#allocation6 + $0x10] sm:$0xff]  ;;  %v97_v14 = vstv %s257_s0 }
  0x1b   :  { %125 = vmatprep.subr.bf16.mxu0 %v222_v0  ;;  %141 = vmatprep.mubr.msk.bf16.mxu0 %vm223_vm0, %v222_v0  ;;  %v55_v2 = vunpack.c.h.s8.bf16 %v47_v1  ;;  %v54_v3 = vunpack.c.l.s8.bf16 %v47_v1  ;;  %v53_v5 = vunpack.c.h.s8.bf16 %v46_v4  ;;  %v52_v6 = vunpack.c.l.s8.bf16 %v46_v4  ;;  %v45_v7 = vld [vmem:[#allocation6 + $0x8] sm:$0xff]  ;;  %v44_v10 = vld [vmem:[#allocation6] sm:$0xff]  ;;  %v43_v13 = vld [vmem:[#allocation3] sm:$0xf]  ;;  %s224_s24 = smov [#allocation8]  }
  0x1c   :  { %v51_v8 = vunpack.c.h.s8.bf16 %v45_v7  ;;  %v50_v9 = vunpack.c.l.s8.bf16 %v45_v7  ;;  %v49_v11 = vunpack.c.h.s8.bf16 %v44_v10  ;;  %v48_v12 = vunpack.c.l.s8.bf16 %v44_v10  ;;  %s106_s25 = sshll.u32 %s224_s24, 4  ;;  %s107_s25 = int_to_ptr.vmem [resolvable:$true] %s106_s25 }
  0x1d   :  { %126 = vmatpush3.bf16.msra.mxu0 %v55_v2  ;;  %s192_s26 = scalar_lea.vmem %s107_s25, 128  ;;  %p197_p11 = scmp.lt.s32.totalorder %s107_s25, %s107_s25 }
  0x1e   :  { %127 = vmatprep.subr.bf16.mxu0 %v222_v0  ;;  %p193_p10 = scmp.ne.s32.totalorder %s107_s25, %s192_s26  ;;  %p198_p12 = scmp.lt.s32.totalorder %s192_s26, %s192_s26 }
  0x20   :  { %p199_p13 = por %p198_p12, %p197_p11 }
  0x21   :  { %128 = vmatpush3.bf16.msra.mxu0 %v54_v3 }
  0x22   :  { %129 = vmatprep.subr.bf16.mxu0 %v222_v0  ;;  %p200_p0 = pnand %p199_p13, %p193_p10 }
  0x25   :  { %130 = vmatpush3.bf16.msra.mxu0 %v53_v5 }
  0x26   :  { %131 = vmatprep.subr.bf16.mxu0 %v222_v0 }
  0x29   :  { %132 = vmatpush3.bf16.msra.mxu0 %v52_v6 }
  0x2a   :  { %133 = vmatprep.subr.bf16.mxu0 %v222_v0 }
  0x2d   :  { %134 = vmatpush3.bf16.msra.mxu0 %v51_v8 }
  0x2e   :  { %135 = vmatprep.subr.bf16.mxu0 %v222_v0 }
  0x31   :  { %136 = vmatpush3.bf16.msra.mxu0 %v50_v9 }
  0x32   :  { %137 = vmatprep.subr.bf16.mxu0 %v222_v0 }
  0x35   :  { %138 = vmatpush3.bf16.msra.mxu0 %v49_v11 }
  0x36   :  { %139 = vmatprep.subr.bf16.mxu0 %v222_v0 }
  0x39   :  { %140 = vmatpush3.bf16.msra.mxu0 %v48_v12 }
  0x3c   :  { %142 = vmatmul.mubr.bf16.vlgmr.msra.gmra.mxu0 %v43_v13 }
  0xfc   :  { %v90_v15 = vpop.f32.mrf.mxu0 }
  0xfd   :  { %v98_v16 = vmul.f32 %v97_v14, %v90_v15 }
  0xfe   :  { %v143_v17 = vpop.f32.mrf.mxu0 }
  0xff   :  { %99 = vst [vmem:[#allocation8] sm:$0xff] %v98_v16 }
 0x100   :  { %v93_v18 = vpop.f32.mrf.mxu0 }
 0x101   :  { %203 = shalt.err (!%p200_p0)
}
 0x102   :  { %109 = dma.vmem_to_hbm [thread:$0]  %s107_s25, 128, %s260_s3, [#allocation5]   ;;  %v144_v19 = vpop.f32.mrf.mxu0 }
 0x103   :  { %216 = dma.done.wait [#allocation5], 128  }
 0x104   :  { %217 = vsyncadd [#allocation5], 4294967168 }
 0x105   :  { %113 = vsyncpa [#allocation4], 1 }
 0x106   :  { %114 = vsyncpa [#allocation7], 1 }
 0x107   :  { %115 = vsyncpa [#allocation5], 1 }

</bundles_post_ra>
